<compile_context>
chip_gen: v5e
topology: v5e:2x2
jax: 0.10.0
libtpu: 0.0.40
codegen_flags: <defaults>
</compile_context>

<pallas_src>
import jax
import jax.numpy as jnp
from jax.experimental import pallas as pl
from jax.experimental.pallas import tpu as pltpu

_IMAGENET_MEAN = (0.485, 0.456, 0.406)
_IMAGENET_STD = (0.229, 0.224, 0.225)
# Fold "x*0.5 + 0.5 then (x - mean)/std" into a single per-channel affine.
_CH_SCALE = tuple(0.5 / s for s in _IMAGENET_STD)
_CH_BIAS = tuple((0.5 - m) / s for m, s in zip(_IMAGENET_MEAN, _IMAGENET_STD))


def _round_up(x, m):
    return (x + m - 1) // m * m


def _bilinear_matrix(in_size, out_size, out_pad):
    """(out_pad, in_size) row-interpolation matrix, PyTorch align_corners=False.

    Each valid row has at most two non-zero taps summing to 1; rows >= out_size
    are zero padding and are sliced away by the caller."""
    dst = jnp.arange(out_size, dtype=jnp.float32)
    src = (dst + 0.5) * (in_size / out_size) - 0.5
    src = jnp.clip(src, 0.0, float(in_size - 1))
    lo = jnp.floor(src).astype(jnp.int32)
    hi = jnp.minimum(lo + 1, in_size - 1)
    w_hi = src - lo.astype(jnp.float32)
    w_lo = 1.0 - w_hi
    rows = jnp.arange(out_size, dtype=jnp.int32)
    m = jnp.zeros((out_pad, in_size), jnp.float32)
    m = m.at[rows, lo].add(w_lo)
    m = m.at[rows, hi].add(w_hi)
    return m


def _prep_upsample_kernel(x_ref, ah_ref, awt_ref, o_ref):
    # x_ref:   (1, 1, H, W)    one (image, channel) plane
    # ah_ref:  (OHP, H)        row-interpolation matrix (padded rows zero)
    # awt_ref: (W, OWP)        transposed column-interpolation matrix
    # o_ref:   (1, 1, OHP, OWP) lane-dense padded output plane
    c = pl.program_id(1)  # channel index -> pick the fused affine constants
    scale = jnp.where(c == 0, _CH_SCALE[0],
                      jnp.where(c == 1, _CH_SCALE[1], _CH_SCALE[2]))
    bias = jnp.where(c == 0, _CH_BIAS[0],
                     jnp.where(c == 1, _CH_BIAS[1], _CH_BIAS[2]))
    # Fused rescale + ImageNet normalize on the small source plane (f32).
    x = x_ref[0, 0] * scale.astype(jnp.float32) + bias.astype(jnp.float32)
    # Separable bilinear resize as two MXU matmuls.
    rows = jnp.dot(ah_ref[...], x, preferred_element_type=jnp.float32)
    o_ref[0, 0] = jnp.dot(rows, awt_ref[...], preferred_element_type=jnp.float32)


def preprocess_and_upsample(x, out_size=(299, 299)):
    """Steps 1-3 of INCEPTION_V3.forward, fused into one Pallas kernel."""
    n, c, h, w = x.shape
    assert c == 3, "expected NCHW RGB input"
    oh, ow = out_size
    # Lane-dense padded output: sublane axis -> multiple of 8, lane axis ->
    # multiple of 128 (unmasked full-lane stores / large DMAs); sliced after.
    ohp = _round_up(oh, 8)
    owp = _round_up(ow, 128)
    ah = _bilinear_matrix(h, oh, ohp)          # (ohp, h)
    awt = _bilinear_matrix(w, ow, owp).T       # (w, owp)
    x = x.astype(jnp.float32)

    # One (image, channel) plane per grid step.  For the sizes this module
    # sees (inputs <= 299x299, output 304x384 padded plane) every block is a
    # few hundred KiB, so double-buffered inputs + output fit comfortably in
    # the 32 MiB default scoped VMEM on v5e/v6e/v7x.
    out = pl.pallas_call(
        _prep_upsample_kernel,
        out_shape=jax.ShapeDtypeStruct((n, c, ohp, owp), jnp.float32),
        grid_spec=pltpu.PrefetchScalarGridSpec(
            num_scalar_prefetch=0,
            grid=(n, c),
            in_specs=[
                pl.BlockSpec((1, 1, h, w), lambda i, j: (i, j, 0, 0)),
                pl.BlockSpec((ohp, h), lambda i, j: (0, 0)),
                pl.BlockSpec((w, owp), lambda i, j: (0, 0)),
            ],
            out_specs=pl.BlockSpec((1, 1, ohp, owp), lambda i, j: (i, j, 0, 0)),
        ),
        compiler_params=pltpu.CompilerParams(
            # Two independent parallel axes -> shards across both v7x TCs
            # even for batch size 1; harmless on v5e/v6e.
            dimension_semantics=("parallel", "parallel"),
        ),
    )(x, ah, awt)

    return out[:, :, :oh, :ow]


def _softmax_kernel(x_ref, o_ref):
    x = x_ref[...].astype(jnp.float32)
    m = jnp.max(x, axis=-1, keepdims=True)
    e = jnp.exp(x - m)
    o_ref[...] = (e / jnp.sum(e, axis=-1, keepdims=True)).astype(o_ref.dtype)


def softmax_lastdim(logits, block_rows=256):
    """Step 5 of the forward: nn.Softmax() over the class dimension."""
    n, k = logits.shape
    tn = min(_round_up(n, 8), block_rows)      # sublane-aligned row tile
    n_pad = _round_up(n, tn)
    xp = logits if n_pad == n else jnp.pad(logits, ((0, n_pad - n), (0, 0)))
    out = pl.pallas_call(
        _softmax_kernel,
        out_shape=jax.ShapeDtypeStruct((n_pad, k), logits.dtype),
        grid_spec=pltpu.PrefetchScalarGridSpec(
            num_scalar_prefetch=0,
            grid=(n_pad // tn,),
            in_specs=[pl.BlockSpec((tn, k), lambda i: (i, 0))],
            out_specs=pl.BlockSpec((tn, k), lambda i: (i, 0)),
        ),
        compiler_params=pltpu.CompilerParams(dimension_semantics=("parallel",)),
    )(xp)
    return out[:n]


if __name__ == "__main__":
    key = jax.random.PRNGKey(0)
    k_img, k_logit = jax.random.split(key)

    # StackGAN-style generator output: NCHW RGB in [-1, 1], small spatial size.
    x = jax.random.uniform(k_img, (2, 3, 16, 16), jnp.float32,
                           minval=-1.0, maxval=1.0)

    y = jax.block_until_ready(preprocess_and_upsample(x))
    assert y.shape == (2, 3, 299, 299)

    # Plain-JAX reference for steps 1-3 (same interpolation matrices).
    mean = jnp.array(_IMAGENET_MEAN, jnp.float32).reshape(1, 3, 1, 1)
    std = jnp.array(_IMAGENET_STD, jnp.float32).reshape(1, 3, 1, 1)
    xn = (x * 0.5 + 0.5 - mean) / std
    ah_ref = _bilinear_matrix(16, 299, 299)
    aw_ref = _bilinear_matrix(16, 299, 299)
    y_ref = jnp.einsum("oh,nchw,pw->ncop", ah_ref, xn, aw_ref,
                       precision=jax.lax.Precision.HIGHEST)
    # Tolerance sized for MXU f32 rounding differences between Mosaic and XLA.
    assert bool(jnp.allclose(y, y_ref, atol=2e-2, rtol=2e-2))

    # TODO(synk): the pretrained torchvision inception_v3 backbone (which
    # produces the logits and the feature output `f`) is not translated -- it
    # needs model_zoo weights fetched over the network, which a self-contained
    # kernel script cannot do.  The stand-in logits below only exercise the
    # final nn.Softmax() stage of the forward.
    logits = jax.random.normal(k_logit, (2, 1000), jnp.float32)
    probs = jax.block_until_ready(softmax_lastdim(logits))
    probs_ref = jax.nn.softmax(logits, axis=-1)
    assert probs.shape == (2, 1000)
    assert bool(jnp.allclose(probs, probs_ref, atol=1e-6, rtol=1e-6))
    assert bool(jnp.allclose(jnp.sum(probs, axis=-1), 1.0, atol=1e-5))

    print("KERNEL_OK")
</pallas_src>

<mosaic_0001>
module attributes {stable_mosaic.version = 11 : i64} {
  func.func @_prep_upsample_kernel(%arg0: i32, %arg1: i32, %arg2: memref<1x1x16x16xf32, #tpu.memory_space<vmem>>, %arg3: memref<304x16xf32, #tpu.memory_space<vmem>>, %arg4: memref<16x384xf32, #tpu.memory_space<vmem>>, %arg5: memref<1x1x304x384xf32, #tpu.memory_space<vmem>>) attributes {dimension_semantics = [#tpu.dimension_semantics<parallel>, #tpu.dimension_semantics<parallel>], iteration_bounds = array<i64: 2, 3>, scalar_prefetch = 0 : i64, scratch_operands = 0 : i64, tpu.core_type = #tpu.core_type<tc>, window_params = [{transform_indices = @transform_0, window_bounds = array<i64: 1, 1, 16, 16>}, {pipeline_mode = #tpu.pipeline_mode<synchronous>, transform_indices = @transform_1, window_bounds = array<i64: 304, 16>}, {pipeline_mode = #tpu.pipeline_mode<synchronous>, transform_indices = @transform_2, window_bounds = array<i64: 16, 384>}, {transform_indices = @transform_3, window_bounds = array<i64: 1, 1, 304, 384>}]} {
    %c0_i32 = arith.constant 0 : i32
    %0 = arith.cmpi eq, %arg1, %c0_i32 : i32
    %c1_i32 = arith.constant 1 : i32
    %1 = arith.cmpi eq, %arg1, %c1_i32 : i32
    %cst = arith.constant 2.23214293 : f32
    %cst_0 = arith.constant 2.22222233 : f32
    %2 = arith.select %1, %cst, %cst_0 : f32
    %cst_1 = arith.constant 2.18340611 : f32
    %3 = arith.select %0, %cst_1, %2 : f32
    %c0_i32_2 = arith.constant 0 : i32
    %4 = arith.cmpi eq, %arg1, %c0_i32_2 : i32
    %c1_i32_3 = arith.constant 1 : i32
    %5 = arith.cmpi eq, %arg1, %c1_i32_3 : i32
    %cst_4 = arith.constant 0.196428567 : f32
    %cst_5 = arith.constant 0.417777777 : f32
    %6 = arith.select %5, %cst_4, %cst_5 : f32
    %cst_6 = arith.constant 0.0655021816 : f32
    %7 = arith.select %4, %cst_6, %6 : f32
    %c0 = arith.constant 0 : index
    %c0_7 = arith.constant 0 : index
    %c0_8 = arith.constant 0 : index
    %c0_9 = arith.constant 0 : index
    %8 = vector.load %arg2[%c0, %c0_7, %c0_8, %c0_9] : memref<1x1x16x16xf32, #tpu.memory_space<vmem>>, vector<1x1x16x16xf32>
    %9 = vector.shape_cast %8 : vector<1x1x16x16xf32> to vector<16x16xf32>
    %10 = vector.broadcast %3 : f32 to vector<16x16xf32>
    %11 = arith.mulf %9, %10 : vector<16x16xf32>
    %12 = vector.broadcast %7 : f32 to vector<16x16xf32>
    %13 = arith.addf %11, %12 : vector<16x16xf32>
    %c0_10 = arith.constant 0 : index
    %c0_11 = arith.constant 0 : index
    %14 = vector.load %arg3[%c0_10, %c0_11] : memref<304x16xf32, #tpu.memory_space<vmem>>, vector<304x16xf32>
    %cst_12 = arith.constant dense<0.000000e+00> : vector<304x16xf32>
    %15 = tpu.matmul %14, %13, %cst_12 {dimension_numbers = #tpu.dot_dimension_numbers<[1], [0], [0], [1], [0, 0, 1, 1], [], []>} : vector<304x16xf32>, vector<16x16xf32>, vector<304x16xf32> -> vector<304x16xf32>
    %c0_13 = arith.constant 0 : index
    %c0_14 = arith.constant 0 : index
    %16 = vector.load %arg4[%c0_13, %c0_14] : memref<16x384xf32, #tpu.memory_space<vmem>>, vector<16x384xf32>
    %cst_15 = arith.constant dense<0.000000e+00> : vector<304x384xf32>
    %17 = tpu.matmul %15, %16, %cst_15 {dimension_numbers = #tpu.dot_dimension_numbers<[1], [0], [0], [1], [0, 0, 1, 1], [], []>} : vector<304x16xf32>, vector<16x384xf32>, vector<304x384xf32> -> vector<304x384xf32>
    %c0_16 = arith.constant 0 : index
    %c0_17 = arith.constant 0 : index
    %c0_18 = arith.constant 0 : index
    %c0_19 = arith.constant 0 : index
    %18 = vector.load %arg5[%c0_16, %c0_17, %c0_18, %c0_19] : memref<1x1x304x384xf32, #tpu.memory_space<vmem>>, vector<1x1x304x384xf32>
    %19 = vector.shape_cast %18 : vector<1x1x304x384xf32> to vector<304x384xf32>
    %20 = vector.shape_cast %17 : vector<304x384xf32> to vector<1x1x304x384xf32>
    tpu.vector_store %arg5[%c0_16, %c0_17, %c0_18, %c0_19], %20 {strides = array<i32>} : memref<1x1x304x384xf32, #tpu.memory_space<vmem>>, vector<1x1x304x384xf32>,
    return
  }
  func.func @transform_0(%arg0: i32, %arg1: i32) -> (i32, i32, i32, i32) {
    %c0_i32 = arith.constant 0 : i32
    %c0_i32_0 = arith.constant 0 : i32
    %c0_i32_1 = arith.constant 0 : i32
    return %arg0, %arg1, %c0_i32, %c0_i32_0 : i32, i32, i32, i32
  }
  func.func @transform_1(%arg0: i32, %arg1: i32) -> (i32, i32) {
    %c0_i32 = arith.constant 0 : i32
    %c0_i32_0 = arith.constant 0 : i32
    %c0_i32_1 = arith.constant 0 : i32
    return %c0_i32, %c0_i32_0 : i32, i32
  }
  func.func @transform_2(%arg0: i32, %arg1: i32) -> (i32, i32) {
    %c0_i32 = arith.constant 0 : i32
    %c0_i32_0 = arith.constant 0 : i32
    %c0_i32_1 = arith.constant 0 : i32
    return %c0_i32, %c0_i32_0 : i32, i32
  }
  func.func @transform_3(%arg0: i32, %arg1: i32) -> (i32, i32, i32, i32) {
    %c0_i32 = arith.constant 0 : i32
    %c0_i32_0 = arith.constant 0 : i32
    %c0_i32_1 = arith.constant 0 : i32
    return %arg0, %arg1, %c0_i32, %c0_i32_0 : i32, i32, i32, i32
  }
}

</mosaic_0001>

<bundles_post_ra>
// kernel: tpu_custom_call.1
= control target key start
LH: loop header
LB: loop body
LE: loop exit
PB: predicated region body
PF: predicated region fallthrough
CT: control target
= control target key end

     0   :  { %s2284_s0 = inlined_call_operand.hbm [shape: f32[2,3,16,16], index: 0, kind: input, shape index: {}]   ;;  %s2285_s1 = inlined_call_operand.vmem [shape: f32[304,16], index: 1, kind: input, shape index: {}]   ;;  %s2286_s2 = inlined_call_operand.hbm [shape: f32[16,384], index: 2, kind: input, shape index: {}]   ;;  %s2287_s3 = inlined_call_operand.hbm [shape: f32[2,3,304,384], index: 3, kind: output, shape index: {}]  }
   0x1   :  { %2294 = sst [smem:[#allocation16_spill]] %s2286_s2 }
   0x2   :  { %8 = vsyncpa [#allocation3], 0 }
   0x3   :  { %10 = vsyncpa [#allocation3 + $0x1], 0 }
   0x4   :  { %11 = vsyncpa [#allocation6], 0 }
   0x5   :  { %12 = vsyncpa [#allocation4], 0 }
   0x6   :  { %14 = vsyncpa [#allocation4 + $0x1], 0  ;;  %s1725_s12 = smov 0   ;;  %s1727_s13 = smov 0  }
   0x7   :  { %s1729_s14 = smov 0   ;;  %s1731_s15 = smov 0  }
   0x8   :  { %s1733_s16 = smov 0   ;;  %s1735_s17 = smov 0  }
   0x9   :  { %s1737_s18 = smov 0   ;;  %s1739_s19 = smov 0  }
   0xa LB: > { %2295 = sst [smem:[#allocation11_spill]] %s1668_s12  ;;  %s1269_s20 = sadd.s32 4294967295, %s1696_s19   ;;  %s1696_s19 = sphi %s1739_s19, %s20_s19   ;;  %s1692_s18 = sphi %s1737_s18, %s2317_s18   ;;  %s1688_s17 = sphi %s1735_s17, %s2312_s17   ;;  %s1684_s16 = sphi %s1733_s16, %s2316_s16   ;;  %s1680_s15 = sphi %s1731_s15, %s2311_s15   ;;  %s1676_s14 = sphi %s1729_s14, %s2315_s14   ;;  %s1672_s13 = sphi %s1727_s13, %s2314_s13   ;;  %s1668_s12 = sphi %s1725_s12, %s2313_s12  }
   0xb   : > { %2296 = sst [smem:[#allocation12_spill]] %s1688_s17  ;;  %s1270_s21 = sadd.s32 4294967294, %s1696_s19  }
   0xc   : > { %p54_p0 = scmp.ne.s32.totalorder %s1672_s13, %s1668_s12  ;;  %p1769_p1 = scmp.eq.s32.totalorder %s1269_s20, 0 }
   0xd   : > { %p1773_p2 = scmp.eq.s32.totalorder %s1269_s20, 5  ;;  %p128_p3 = scmp.eq.s32.totalorder %s1270_s21, 5 }
   0xe   : > { %p1779_p4 = por %p1769_p1, %p54_p0  ;;  %p1271_p5 = scmp.ge.s32.totalorder %s1696_s19, 1 }
   0xf   : > { %p1784_p6 = por %p128_p3, %p54_p0  ;;  %p135_p7 = scmp.lt.s32.totalorder %s1696_s19, 7 }
  0x10   : > { %s2302_s2 = sld [smem:[#allocation16_spill]]  ;;  %s1698_s30 = smov [#allocation5]  }
  0x11   : > { %s2300_s25 = scalar_select %p1784_p6, 1, 0 }
  0x12   : > { %p1792_p8 = pnand %p1271_p5, %p135_p7  ;;  %s151_s4 = sshll.u32 %s1698_s30, 4  ;;  %s152_s4 = int_to_ptr.vmem [resolvable:$true] %s151_s4 }
  0x13   : > { %2301 = sst [smem:[#allocation13_spill]] %s2300_s25  ;;  %s1699_s5 = smov 384  }
  0x14   : > { %p1447_p9 = pneg %p1792_p8  ;;  %s1700_s6 = smov 24  }
  0x15   : > { %s29_s7 = sadd.s32 1, %s1688_s17  ;;  %s32_s8 = sadd.s32 1, %s1692_s18 }
  0x16   : > { %s149_s28 = sshll.u32 %s2302_s2, 4  ;;  %p1448_p10 = pnand %p1447_p9, %p1769_p1  ;;  %s150_s28 = int_to_ptr.hbm [resolvable:$true] %s149_s28 }
  0x17   : > { %p30_p11 = scmp.ge.s32.totalorder %s29_s7, 3  ;;  %s41_s9 = sadd.s32 1, %s1676_s14 }
  0x18   : > { %1450 = dma.hbm_to_vmem [thread:$0]  (!%p1448_p10), %s150_s28, 768, %s152_s4, [#allocation6], %s1699_s5, %s1699_s5, %s1700_s6  }
  0x19   : > { %p48_p12 = scmp.ne.s32.totalorder %s1676_s14, %s1672_s13  ;;  %s2319_s7 = smov (%p30_p11, %s29_s7), 0 }
  0x1a   : > { %2304 = sst [smem:[#allocation14_spill]] %s2319_s7  ;;  %s2321_s8 = smov (!%p30_p11, %s32_s8), %s1692_s18 }
  0x1b   : > { %s37_s10 = ssub.s32 %s1688_s17, %s2319_s7  ;;  %p49_p13 = scmp.eq.s32.totalorder %s1696_s19, 0 }
  0x1c   : > { %p34_p0 = scmp.ge.s32.totalorder %s2321_s8, 2  ;;  %p1813_p3 = por %p1773_p2, %p48_p12 }
  0x1d   : > { %p1817_p5 = por %p49_p13, %p48_p12  ;;  %p1460_p7 = scmp.lt.s32.totalorder %s1696_s19, 6 }
  0x1e   : > { %s2305_s11 = scalar_select %p1813_p3, 1, 0 }
  0x1f   : > { %s2323_s8 = smov (%p34_p0, %s2321_s8), 0  ;;  %s165_s21 = sand.u32 1, %s1676_s14  }
  0x20   : > { %2306 = sst [smem:[#allocation15_spill]] %s2305_s11  ;;  %s1275_s26 = sshll.u32 %s1688_s17, 1 }
  0x21   : > { %s36_s27 = ssub.s32 %s1692_s18, %s2323_s8  ;;  %s1274_s30 = sshll.u32 %s165_s21, 4 }
  0x22   : > { %s38_s28 = sor.u32 %s37_s10, %s36_s27  ;;  %s1435_s23 = smul.u32 6, %s1692_s18 }
  0x23   : > { %p39_p9 = scmp.eq.s32.totalorder %s38_s28, 0  ;;  %s169_s4 = scalar_lea.vmem [#allocation2], %s1274_s30 }
  0x24   : > { %s179_s5 = sshll.u32 %s169_s4, 4  ;;  %s174_s2 = sadd.s32 %s1435_s23, %s1275_s26  ;;  %s180_s5 = int_to_ptr.vmem [resolvable:$true] %s179_s5 }
  0x25   : > { %s1830_s6 = scalar_select %p39_p9, %s1676_s14, %s41_s9  }
  0x26   : > { %s1276_s7 = sshll.u32 %s174_s2, 3  ;;  %p1452_p2 = pnand %p1460_p7, %p1817_p5 }
  0x27   : > { %s176_s11 = scalar_lea.hbm %s2284_s0, %s1276_s7  ;;  %s166_s10 = scalar_lea.sflag [#allocation3], %s165_s21 }
  0x28   : > { %s177_s17 = sshll.u32 %s176_s11, 4  ;;  %s1701_s27 = smov 128   ;;  %s178_s17 = int_to_ptr.hbm [resolvable:$true] %s177_s17 }
  0x29   : > { %s1702_s28 = smov 8   ;;  %191 = sbr.rel (%p1792_p8) target bundleno = 621 (0x26d), region = 32 }
  0x2a   : > { %1454 = dma.hbm_to_vmem [thread:$0]  (!%p1452_p2), %s178_s17, 256, %s180_s5, %s166_s10, %s1701_s27, %s1701_s27, %s1702_s28  }
  0x2b   : > { %s1842_s9 = sand.u32 (!%p1792_p8), 1, %s1672_s13  }
  0x2c   : > { %s1278_s2 = sshll.u32 (!%p1792_p8), %s1842_s9, 4  ;;  %s194_s20 = scalar_lea.sflag (!%p1792_p8), [#allocation3], %s1842_s9 }
  0x2d   : > { %s197_s26 = scalar_lea.vmem (!%p1792_p8), [#allocation2], %s1278_s2 }
  0x2e   : > { %1655 = dma.done.wait (%p1779_p4), %s194_s20, 256  }
  0x2f   : > { %1657 = vsyncadd (%p1779_p4), %s194_s20, 4294967040 }
  0x30   : > { %1659 = dma.done.wait (%p1769_p1), [#allocation6], 768  }
  0x31   : > { %1661 = vsyncadd (%p1769_p1), [#allocation6], 4294966528  ;;  %p226_p8 = scmp.eq.s32.totalorder %s1680_s15, 0  ;;  %p227_p10 = scmp.eq.s32.totalorder %s1680_s15, 1  ;;  %v233_v1 = vld [vmem:[%s197_s26 + $0x8] sm:$0xff]  ;;  %v232_v3 = vld [vmem:[%s197_s26] sm:$0xff] }
  0x32   : > { %v240_v8 = vld [vmem:[%s2285_s1] sm:$0xff]  ;;  %vm278_vm0 = vcmask 130048   ;;  %v241_v9 = vld [vmem:[%s2285_s1 + $0x8] sm:$0xff]  ;;  %v242_v10 = vld [vmem:[%s2285_s1 + $0x10] sm:$0xff]  ;;  %s1436_s30 = smul.u32 912, %s1842_s9  ;;  %s1152_s10 = scalar_lea.sflag [#allocation4], %s1842_s9 }
  0x33   : > { %s228_s12 = scalar_select %p227_p10, 2.232143, 2.2222223  ;;  %v243_v11 = vld [vmem:[%s2285_s1 + $0x18] sm:$0xff]  ;;  %v244_v12 = vld [vmem:[%s2285_s1 + $0x20] sm:$0xff] }
  0x34   : > { %s230_s17 = scalar_select %p227_p10, 0.19642857, 0.41777778  ;;  %v245_v13 = vld [vmem:[%s2285_s1 + $0x28] sm:$0xff]  ;;  %v246_v14 = vld [vmem:[%s2285_s1 + $0x30] sm:$0xff] }
  0x35   : > { %s2325_s12 = smov (%p226_p8, %s228_s12), 2.183406  ;;  %v247_v15 = vld [vmem:[%s2285_s1 + $0x38] sm:$0xff]  ;;  %v248_v16 = vld [vmem:[%s2285_s1 + $0x40] sm:$0xff]  ;;  %v249_v17 = vld [vmem:[%s2285_s1 + $0x48] sm:$0xff]  ;;  %s2033_s23 = scalar_lea.vmem [#allocation7], %s1436_s30 }
  0x36   : > { %s2327_s17 = smov (%p226_p8, %s230_s17), 0.06550218  ;;  %v234_v0 = vstv %s2325_s12  ;;  %v250_v18 = vld [vmem:[%s2285_s1 + $0x50] sm:$0xff]  ;;  %v251_v19 = vld [vmem:[%s2285_s1 + $0x58] sm:$0xff]  ;;  %v528_v21 = vld [vmem:[#allocation5 + $0x20] sm:$0xff]  ;;  %s1437_s25 = smul.u32 114, %s1680_s15 }
  0x37   : > { %v237_v2 = vstv %s2327_s17  ;;  %v236_v4 = vmul.f32 %v234_v0, %v233_v1  ;;  %v235_v5 = vmul.f32 %v234_v0, %v232_v3  ;;  %v527_v20 = vld [vmem:[#allocation5 + $0x18] sm:$0xff]  ;;  %v529_v22 = vld [vmem:[#allocation5 + $0x28] sm:$0xff]  ;;  %789 = vmatpush.msra.mxu2 %v528_v21  ;;  %v524_v23 = vld [vmem:[#allocation5] sm:$0xff]  ;;  %s1438_s29 = smul.u32 342, %s1684_s16  ;;  %s1166_s4 = sshll.u32 %s2033_s23, 4  ;;  %s1167_s4 = int_to_ptr.vmem [resolvable:$true] %s1166_s4 }
  0x38   : > { %658 = vmatpush.msra.mxu1 %v527_v20  ;;  %920 = vmatpush.msra.mxu3 %v529_v22  ;;  %v525_v24 = vld [vmem:[#allocation5 + $0x8] sm:$0xff]  ;;  %v526_v25 = vld [vmem:[#allocation5 + $0x10] sm:$0xff]  ;;  %v252_v26 = vld [vmem:[%s2285_s1 + $0x60] sm:$0xff]  ;;  %s1614_s26 = scalar_lea.hbm %s2287_s3, 5472 }
  0x39   : > { %v239_v6 = vadd.f32 %v237_v2, %v236_v4  ;;  %v238_v7 = vadd.f32 %v237_v2, %v235_v5  ;;  %790 = vmatpush.msra.mxu2 %v525_v24  ;;  %v253_v27 = vld [vmem:[%s2285_s1 + $0x68] sm:$0xff]  ;;  %v254_v28 = vld [vmem:[%s2285_s1 + $0x70] sm:$0xff]  ;;  %v255_v29 = vld [vmem:[%s2285_s1 + $0x78] sm:$0xff]  ;;  %s1163_s7 = sadd.s32 %s1438_s29, %s1437_s25 }
  0x3a   : > { %659 = vmatpush.msra.mxu1 %v524_v23  ;;  %921 = vmatpush.msra.mxu3 %v526_v25  ;;  %v256_v31 = vld [vmem:[%s2285_s1 + $0x80] sm:$0xff]  ;;  %v257_v33 = vld [vmem:[%s2285_s1 + $0x88] sm:$0xff]  ;;  %v258_v35 = vld [vmem:[%s2285_s1 + $0x90] sm:$0xff]  ;;  %s1432_s11 = sshll.u32 %s1163_s7, 3 }
  0x3b   : > { %407 = vmatpush.msra.mxu0 %v239_v6  ;;  %v259_v37 = vld [vmem:[%s2285_s1 + $0x98] sm:$0xff]  ;;  %v260_v39 = vld [vmem:[%s2285_s1 + $0xa0] sm:$0xff]  ;;  %v261_v41 = vld [vmem:[%s2285_s1 + $0xa8] sm:$0xff]  ;;  %s1165_s16 = scalar_lea.hbm %s2287_s3, %s1432_s11 }
  0x3c   : > { %v262_v43 = vld [vmem:[%s2285_s1 + $0xb0] sm:$0xff]  ;;  %v263_v45 = vld [vmem:[%s2285_s1 + $0xb8] sm:$0xff]  ;;  %v264_v47 = vld [vmem:[%s2285_s1 + $0xc0] sm:$0xff]  ;;  %s1168_s5 = sshll.u32 %s1165_s16, 4  ;;  %s1169_s5 = int_to_ptr.hbm [resolvable:$true] %s1168_s5 }
  0x3d   : > { %408 = vmatpush.msra.mxu0 %v238_v7  ;;  %v265_v49 = vld [vmem:[%s2285_s1 + $0xc8] sm:$0xff]  ;;  %v266_v51 = vld [vmem:[%s2285_s1 + $0xd0] sm:$0xff]  ;;  %v267_v53 = vld [vmem:[%s2285_s1 + $0xd8] sm:$0xff]  ;;  %s1608_s27 = sshra.s32 %s1169_s5, 4  ;;  %s1609_s27 = int_to_ptr.hbm [resolvable:$true] %s1608_s27 }
  0x3e   : > { %1280 = vmatmul.msk.f32.vlgmr.msra.gmra.mxu0 %vm278_vm0, %v240_v8  ;;  %v268_v55 = vld [vmem:[%s2285_s1 + $0xe0] sm:$0xff]  ;;  %v269_v57 = vld [vmem:[%s2285_s1 + $0xe8] sm:$0xff]  ;;  %v270_v59 = vld [vmem:[%s2285_s1 + $0xf0] sm:$0xff]  ;;  %s1610_s28 = scalar_lea.hbm %s1609_s27, 912  ;;  %p1615_p12 = scmp.lt.s32.totalorder %s1609_s27, %s2287_s3 }
  0x3f   : > { %v271_v61 = vld [vmem:[%s2285_s1 + $0xf8] sm:$0xff]  ;;  %v272_v0 = vld [vmem:[%s2285_s1 + $0x100] sm:$0xff]  ;;  %v273_v5 = vld [vmem:[%s2285_s1 + $0x108] sm:$0xff]  ;;  %p1611_p1 = scmp.ne.s32.totalorder %s1609_s27, %s1610_s28  ;;  %p1616_p13 = scmp.lt.s32.totalorder %s1614_s26, %s1610_s28 }
  0x40   : > { %v276_v20 = vld [vmem:[%s2285_s1 + $0x120] sm:$0xff]  ;;  %v277_v25 = vld [vmem:[%s2285_s1 + $0x128] sm:$0xff] }
  0x41   : > { %p1612_p4 = pnand %p1611_p1, %p1813_p3  ;;  %p1617_p0 = por %p1616_p13, %p1615_p12 }
  0x43   : > { %p1613_p11 = pneg %p1612_p4 }
  0x45   : > { %p1618_p5 = pnand %p1617_p0, %p1613_p11 }
  0x46   : > { %1281 = vmatmul.msk.f32.gmra.mxu0 %vm278_vm0, %v241_v9 }
  0x4e   : > { %1282 = vmatmul.msk.f32.gmra.mxu0 %vm278_vm0, %v242_v10  ;;  %v274_v10 = vld [vmem:[%s2285_s1 + $0x110] sm:$0xff] }
  0x56   : > { %1283 = vmatmul.msk.f32.gmra.mxu0 %vm278_vm0, %v243_v11 }
  0x5e   : > { %1284 = vmatmul.msk.f32.gmra.mxu0 %vm278_vm0, %v244_v12 }
  0x66   : > { %1285 = vmatmul.msk.f32.gmra.mxu0 %vm278_vm0, %v245_v13 }
  0x6e   : > { %1286 = vmatmul.msk.f32.gmra.mxu0 %vm278_vm0, %v246_v14 }
  0x76   : > { %1287 = vmatmul.msk.f32.gmra.mxu0 %vm278_vm0, %v247_v15  ;;  %v275_v15 = vld [vmem:[%s2285_s1 + $0x118] sm:$0xff] }
  0x7e   : > { %1288 = vmatmul.msk.f32.gmra.mxu0 %vm278_vm0, %v248_v16 }
  0x86   : > { %1289 = vmatmul.msk.f32.gmra.mxu0 %vm278_vm0, %v249_v17 }
  0x8e   : > { %1290 = vmatmul.msk.f32.gmra.mxu0 %vm278_vm0, %v250_v18 }
  0x96   : > { %1291 = vmatmul.msk.f32.gmra.mxu0 %vm278_vm0, %v251_v19 }
  0x9e   : > { %1292 = vmatmul.msk.f32.gmra.mxu0 %vm278_vm0, %v252_v26 }
  0xa6   : > { %1293 = vmatmul.msk.f32.gmra.mxu0 %vm278_vm0, %v253_v27 }
  0xae   : > { %1294 = vmatmul.msk.f32.gmra.mxu0 %vm278_vm0, %v254_v28 }
  0xb6   : > { %1295 = vmatmul.msk.f32.gmra.mxu0 %vm278_vm0, %v255_v29 }
  0xbb   : > { %v410_v30 = vpop.f32.mrf.mxu0 }
  0xbc   : > { %1318 = vmatmul.msk.f32.vlgmr.msra.gmra.mxu1 %vm278_vm0, %v410_v30  ;;  %1356 = vmatmul.msk.f32.vlgmr.msra.gmra.mxu2 %vm278_vm0, %v410_v30 }
  0xbd   : > { %1394 = vmatmul.msk.f32.vlgmr.msra.gmra.mxu3 %vm278_vm0, %v410_v30 }
  0xbe   : > { %1296 = vmatmul.msk.f32.gmra.mxu0 %vm278_vm0, %v256_v31 }
  0xc3   : > { %v413_v32 = vpop.f32.mrf.mxu0 }
  0xc4   : > { %1319 = vmatmul.msk.f32.gmra.mxu1 %vm278_vm0, %v413_v32  ;;  %1357 = vmatmul.msk.f32.gmra.mxu2 %vm278_vm0, %v413_v32 }
  0xc5   : > { %1395 = vmatmul.msk.f32.gmra.mxu3 %vm278_vm0, %v413_v32 }
  0xc6   : > { %1297 = vmatmul.msk.f32.gmra.mxu0 %vm278_vm0, %v257_v33 }
  0xcb   : > { %v416_v34 = vpop.f32.mrf.mxu0 }
  0xcc   : > { %1320 = vmatmul.msk.f32.gmra.mxu1 %vm278_vm0, %v416_v34  ;;  %1358 = vmatmul.msk.f32.gmra.mxu2 %vm278_vm0, %v416_v34 }
  0xcd   : > { %1396 = vmatmul.msk.f32.gmra.mxu3 %vm278_vm0, %v416_v34 }
  0xce   : > { %1298 = vmatmul.msk.f32.gmra.mxu0 %vm278_vm0, %v258_v35 }
  0xd3   : > { %v419_v36 = vpop.f32.mrf.mxu0 }
  0xd4   : > { %1321 = vmatmul.msk.f32.gmra.mxu1 %vm278_vm0, %v419_v36  ;;  %1359 = vmatmul.msk.f32.gmra.mxu2 %vm278_vm0, %v419_v36 }
  0xd5   : > { %1397 = vmatmul.msk.f32.gmra.mxu3 %vm278_vm0, %v419_v36 }
  0xd6   : > { %1299 = vmatmul.msk.f32.gmra.mxu0 %vm278_vm0, %v259_v37 }
  0xdb   : > { %v422_v38 = vpop.f32.mrf.mxu0 }
  0xdc   : > { %1322 = vmatmul.msk.f32.gmra.mxu1 %vm278_vm0, %v422_v38  ;;  %1360 = vmatmul.msk.f32.gmra.mxu2 %vm278_vm0, %v422_v38 }
  0xdd   : > { %1398 = vmatmul.msk.f32.gmra.mxu3 %vm278_vm0, %v422_v38 }
  0xde   : > { %1300 = vmatmul.msk.f32.gmra.mxu0 %vm278_vm0, %v260_v39 }
  0xe3   : > { %v425_v40 = vpop.f32.mrf.mxu0 }
  0xe4   : > { %1323 = vmatmul.msk.f32.gmra.mxu1 %vm278_vm0, %v425_v40  ;;  %1361 = vmatmul.msk.f32.gmra.mxu2 %vm278_vm0, %v425_v40 }
  0xe5   : > { %1399 = vmatmul.msk.f32.gmra.mxu3 %vm278_vm0, %v425_v40 }
  0xe6   : > { %1301 = vmatmul.msk.f32.gmra.mxu0 %vm278_vm0, %v261_v41 }
  0xeb   : > { %v428_v42 = vpop.f32.mrf.mxu0 }
  0xec   : > { %1324 = vmatmul.msk.f32.gmra.mxu1 %vm278_vm0, %v428_v42  ;;  %1362 = vmatmul.msk.f32.gmra.mxu2 %vm278_vm0, %v428_v42 }
  0xed   : > { %1400 = vmatmul.msk.f32.gmra.mxu3 %vm278_vm0, %v428_v42 }
  0xee   : > { %1302 = vmatmul.msk.f32.gmra.mxu0 %vm278_vm0, %v262_v43 }
  0xf3   : > { %v431_v44 = vpop.f32.mrf.mxu0 }
  0xf4   : > { %1325 = vmatmul.msk.f32.gmra.mxu1 %vm278_vm0, %v431_v44  ;;  %1363 = vmatmul.msk.f32.gmra.mxu2 %vm278_vm0, %v431_v44 }
  0xf5   : > { %1401 = vmatmul.msk.f32.gmra.mxu3 %vm278_vm0, %v431_v44 }
  0xf6   : > { %1303 = vmatmul.msk.f32.gmra.mxu0 %vm278_vm0, %v263_v45 }
  0xfb   : > { %v434_v46 = vpop.f32.mrf.mxu0 }
  0xfc   : > { %1326 = vmatmul.msk.f32.gmra.mxu1 %vm278_vm0, %v434_v46  ;;  %1364 = vmatmul.msk.f32.gmra.mxu2 %vm278_vm0, %v434_v46 }
  0xfd   : > { %1402 = vmatmul.msk.f32.gmra.mxu3 %vm278_vm0, %v434_v46 }
  0xfe   : > { %1304 = vmatmul.msk.f32.gmra.mxu0 %vm278_vm0, %v264_v47 }
 0x103   : > { %v437_v48 = vpop.f32.mrf.mxu0 }
 0x104   : > { %1327 = vmatmul.msk.f32.gmra.mxu1 %vm278_vm0, %v437_v48  ;;  %1365 = vmatmul.msk.f32.gmra.mxu2 %vm278_vm0, %v437_v48 }
 0x105   : > { %1403 = vmatmul.msk.f32.gmra.mxu3 %vm278_vm0, %v437_v48 }
 0x106   : > { %1305 = vmatmul.msk.f32.gmra.mxu0 %vm278_vm0, %v265_v49 }
 0x10b   : > { %v440_v50 = vpop.f32.mrf.mxu0 }
 0x10c   : > { %1328 = vmatmul.msk.f32.gmra.mxu1 %vm278_vm0, %v440_v50  ;;  %1366 = vmatmul.msk.f32.gmra.mxu2 %vm278_vm0, %v440_v50 }
 0x10d   : > { %1404 = vmatmul.msk.f32.gmra.mxu3 %vm278_vm0, %v440_v50 }
 0x10e   : > { %1306 = vmatmul.msk.f32.gmra.mxu0 %vm278_vm0, %v266_v51 }
 0x113   : > { %v443_v52 = vpop.f32.mrf.mxu0 }
 0x114   : > { %1329 = vmatmul.msk.f32.gmra.mxu1 %vm278_vm0, %v443_v52  ;;  %1367 = vmatmul.msk.f32.gmra.mxu2 %vm278_vm0, %v443_v52 }
 0x115   : > { %1405 = vmatmul.msk.f32.gmra.mxu3 %vm278_vm0, %v443_v52 }
 0x116   : > { %1307 = vmatmul.msk.f32.gmra.mxu0 %vm278_vm0, %v267_v53 }
 0x11b   : > { %v446_v54 = vpop.f32.mrf.mxu0 }
 0x11c   : > { %1330 = vmatmul.msk.f32.gmra.mxu1 %vm278_vm0, %v446_v54  ;;  %1368 = vmatmul.msk.f32.gmra.mxu2 %vm278_vm0, %v446_v54 }
 0x11d   : > { %1406 = vmatmul.msk.f32.gmra.mxu3 %vm278_vm0, %v446_v54 }
 0x11e   : > { %1308 = vmatmul.msk.f32.gmra.mxu0 %vm278_vm0, %v268_v55 }
 0x123   : > { %v449_v56 = vpop.f32.mrf.mxu0 }
 0x124   : > { %1331 = vmatmul.msk.f32.gmra.mxu1 %vm278_vm0, %v449_v56  ;;  %1369 = vmatmul.msk.f32.gmra.mxu2 %vm278_vm0, %v449_v56 }
 0x125   : > { %1407 = vmatmul.msk.f32.gmra.mxu3 %vm278_vm0, %v449_v56 }
 0x126   : > { %1309 = vmatmul.msk.f32.gmra.mxu0 %vm278_vm0, %v269_v57 }
 0x12b   : > { %v452_v58 = vpop.f32.mrf.mxu0 }
 0x12c   : > { %1332 = vmatmul.msk.f32.gmra.mxu1 %vm278_vm0, %v452_v58  ;;  %1370 = vmatmul.msk.f32.gmra.mxu2 %vm278_vm0, %v452_v58 }
 0x12d   : > { %1408 = vmatmul.msk.f32.gmra.mxu3 %vm278_vm0, %v452_v58 }
 0x12e   : > { %1310 = vmatmul.msk.f32.gmra.mxu0 %vm278_vm0, %v270_v59 }
 0x133   : > { %v455_v60 = vpop.f32.mrf.mxu0 }
 0x134   : > { %1333 = vmatmul.msk.f32.gmra.mxu1 %vm278_vm0, %v455_v60  ;;  %1371 = vmatmul.msk.f32.gmra.mxu2 %vm278_vm0, %v455_v60 }
 0x135   : > { %1409 = vmatmul.msk.f32.gmra.mxu3 %vm278_vm0, %v455_v60 }
 0x136   : > { %1311 = vmatmul.msk.f32.gmra.mxu0 %vm278_vm0, %v271_v61 }
 0x139   : > { %v661_v62 = vpop.f32.mrf.mxu1 }
 0x13a   : > { %1037 = vst [vmem:[%s2033_s23] sm:$0xff] %v661_v62 }
 0x13b   : > { %v458_v63 = vpop.f32.mrf.mxu0 }
 0x13c   : > { %1334 = vmatmul.msk.f32.gmra.mxu1 %vm278_vm0, %v458_v63  ;;  %1372 = vmatmul.msk.f32.gmra.mxu2 %vm278_vm0, %v458_v63 }
 0x13d   : > { %1410 = vmatmul.msk.f32.gmra.mxu3 %vm278_vm0, %v458_v63 }
 0x13e   : > { %1312 = vmatmul.msk.f32.gmra.mxu0 %vm278_vm0, %v272_v0 }
 0x13f   : > { %v792_v1 = vpop.f32.mrf.mxu2 }
 0x140   : > { %1038 = vst [vmem:[%s2033_s23 + $0x8] sm:$0xff] %v792_v1  ;;  %v923_v2 = vpop.f32.mrf.mxu3 }
 0x141   : > { %1039 = vst [vmem:[%s2033_s23 + $0x10] sm:$0xff] %v923_v2  ;;  %v664_v3 = vpop.f32.mrf.mxu1 }
 0x142   : > { %1040 = vst [vmem:[%s2033_s23 + $0x18] sm:$0xff] %v664_v3 }
 0x143   : > { %v461_v4 = vpop.f32.mrf.mxu0 }
 0x144   : > { %1335 = vmatmul.msk.f32.gmra.mxu1 %vm278_vm0, %v461_v4  ;;  %1373 = vmatmul.msk.f32.gmra.mxu2 %vm278_vm0, %v461_v4 }
 0x145   : > { %1411 = vmatmul.msk.f32.gmra.mxu3 %vm278_vm0, %v461_v4 }
 0x146   : > { %1313 = vmatmul.msk.f32.gmra.mxu0 %vm278_vm0, %v273_v5 }
 0x147   : > { %v795_v6 = vpop.f32.mrf.mxu2 }
 0x148   : > { %1041 = vst [vmem:[%s2033_s23 + $0x20] sm:$0xff] %v795_v6  ;;  %v926_v7 = vpop.f32.mrf.mxu3 }
 0x149   : > { %1042 = vst [vmem:[%s2033_s23 + $0x28] sm:$0xff] %v926_v7  ;;  %v667_v8 = vpop.f32.mrf.mxu1 }
 0x14a   : > { %1043 = vst [vmem:[%s2033_s23 + $0x30] sm:$0xff] %v667_v8 }
 0x14b   : > { %v464_v9 = vpop.f32.mrf.mxu0 }
 0x14c   : > { %1336 = vmatmul.msk.f32.gmra.mxu1 %vm278_vm0, %v464_v9  ;;  %1374 = vmatmul.msk.f32.gmra.mxu2 %vm278_vm0, %v464_v9 }
 0x14d   : > { %1412 = vmatmul.msk.f32.gmra.mxu3 %vm278_vm0, %v464_v9 }
 0x14e   : > { %1314 = vmatmul.msk.f32.gmra.mxu0 %vm278_vm0, %v274_v10 }
 0x14f   : > { %v798_v11 = vpop.f32.mrf.mxu2 }
 0x150   : > { %1044 = vst [vmem:[%s2033_s23 + $0x38] sm:$0xff] %v798_v11  ;;  %v929_v12 = vpop.f32.mrf.mxu3 }
 0x151   : > { %1045 = vst [vmem:[%s2033_s23 + $0x40] sm:$0xff] %v929_v12  ;;  %v670_v13 = vpop.f32.mrf.mxu1 }
 0x152   : > { %1046 = vst [vmem:[%s2033_s23 + $0x48] sm:$0xff] %v670_v13 }
 0x153   : > { %v467_v14 = vpop.f32.mrf.mxu0 }
 0x154   : > { %1337 = vmatmul.msk.f32.gmra.mxu1 %vm278_vm0, %v467_v14  ;;  %1375 = vmatmul.msk.f32.gmra.mxu2 %vm278_vm0, %v467_v14 }
 0x155   : > { %1413 = vmatmul.msk.f32.gmra.mxu3 %vm278_vm0, %v467_v14 }
 0x156   : > { %1315 = vmatmul.msk.f32.gmra.mxu0 %vm278_vm0, %v275_v15 }
 0x157   : > { %v801_v16 = vpop.f32.mrf.mxu2 }
 0x158   : > { %1047 = vst [vmem:[%s2033_s23 + $0x50] sm:$0xff] %v801_v16  ;;  %v932_v17 = vpop.f32.mrf.mxu3 }
 0x159   : > { %1048 = vst [vmem:[%s2033_s23 + $0x58] sm:$0xff] %v932_v17  ;;  %v673_v18 = vpop.f32.mrf.mxu1 }
 0x15a   : > { %1049 = vst [vmem:[%s2033_s23 + $0x60] sm:$0xff] %v673_v18 }
 0x15b   : > { %v470_v19 = vpop.f32.mrf.mxu0 }
 0x15c   : > { %1338 = vmatmul.msk.f32.gmra.mxu1 %vm278_vm0, %v470_v19  ;;  %1376 = vmatmul.msk.f32.gmra.mxu2 %vm278_vm0, %v470_v19 }
 0x15d   : > { %1414 = vmatmul.msk.f32.gmra.mxu3 %vm278_vm0, %v470_v19 }
 0x15e   : > { %1316 = vmatmul.msk.f32.gmra.mxu0 %vm278_vm0, %v276_v20 }
 0x15f   : > { %v804_v21 = vpop.f32.mrf.mxu2 }
 0x160   : > { %1050 = vst [vmem:[%s2033_s23 + $0x68] sm:$0xff] %v804_v21  ;;  %v935_v22 = vpop.f32.mrf.mxu3 }
 0x161   : > { %1051 = vst [vmem:[%s2033_s23 + $0x70] sm:$0xff] %v935_v22  ;;  %v676_v23 = vpop.f32.mrf.mxu1 }
 0x162   : > { %1052 = vst [vmem:[%s2033_s23 + $0x78] sm:$0xff] %v676_v23 }
 0x163   : > { %v473_v24 = vpop.f32.mrf.mxu0 }
 0x164   : > { %1339 = vmatmul.msk.f32.gmra.mxu1 %vm278_vm0, %v473_v24  ;;  %1377 = vmatmul.msk.f32.gmra.mxu2 %vm278_vm0, %v473_v24 }
 0x165   : > { %1415 = vmatmul.msk.f32.gmra.mxu3 %vm278_vm0, %v473_v24 }
 0x166   : > { %1317 = vmatmul.msk.f32.gmra.mxu0 %vm278_vm0, %v277_v25 }
 0x167   : > { %v807_v26 = vpop.f32.mrf.mxu2 }
 0x168   : > { %1053 = vst [vmem:[%s2033_s23 + $0x80] sm:$0xff] %v807_v26  ;;  %v938_v27 = vpop.f32.mrf.mxu3 }
 0x169   : > { %1054 = vst [vmem:[%s2033_s23 + $0x88] sm:$0xff] %v938_v27  ;;  %v679_v28 = vpop.f32.mrf.mxu1 }
 0x16a   : > { %1055 = vst [vmem:[%s2033_s23 + $0x90] sm:$0xff] %v679_v28 }
 0x16b   : > { %v476_v29 = vpop.f32.mrf.mxu0 }
 0x16c   : > { %1340 = vmatmul.msk.f32.gmra.mxu1 %vm278_vm0, %v476_v29  ;;  %1378 = vmatmul.msk.f32.gmra.mxu2 %vm278_vm0, %v476_v29 }
 0x16d   : > { %1416 = vmatmul.msk.f32.gmra.mxu3 %vm278_vm0, %v476_v29 }
 0x16f   : > { %v810_v30 = vpop.f32.mrf.mxu2 }
 0x170   : > { %1056 = vst [vmem:[%s2033_s23 + $0x98] sm:$0xff] %v810_v30  ;;  %v941_v31 = vpop.f32.mrf.mxu3 }
 0x171   : > { %1057 = vst [vmem:[%s2033_s23 + $0xa0] sm:$0xff] %v941_v31  ;;  %v682_v32 = vpop.f32.mrf.mxu1 }
 0x172   : > { %1058 = vst [vmem:[%s2033_s23 + $0xa8] sm:$0xff] %v682_v32 }
 0x173   : > { %v479_v33 = vpop.f32.mrf.mxu0 }
 0x174   : > { %1341 = vmatmul.msk.f32.gmra.mxu1 %vm278_vm0, %v479_v33  ;;  %1379 = vmatmul.msk.f32.gmra.mxu2 %vm278_vm0, %v479_v33 }
 0x175   : > { %1417 = vmatmul.msk.f32.gmra.mxu3 %vm278_vm0, %v479_v33 }
 0x177   : > { %v813_v34 = vpop.f32.mrf.mxu2 }
 0x178   : > { %1059 = vst [vmem:[%s2033_s23 + $0xb0] sm:$0xff] %v813_v34  ;;  %v944_v35 = vpop.f32.mrf.mxu3 }
 0x179   : > { %1060 = vst [vmem:[%s2033_s23 + $0xb8] sm:$0xff] %v944_v35  ;;  %v685_v36 = vpop.f32.mrf.mxu1 }
 0x17a   : > { %1061 = vst [vmem:[%s2033_s23 + $0xc0] sm:$0xff] %v685_v36 }
 0x17b   : > { %v482_v37 = vpop.f32.mrf.mxu0 }
 0x17c   : > { %1342 = vmatmul.msk.f32.gmra.mxu1 %vm278_vm0, %v482_v37  ;;  %1380 = vmatmul.msk.f32.gmra.mxu2 %vm278_vm0, %v482_v37 }
 0x17d   : > { %1418 = vmatmul.msk.f32.gmra.mxu3 %vm278_vm0, %v482_v37 }
 0x17f   : > { %v816_v38 = vpop.f32.mrf.mxu2 }
 0x180   : > { %1062 = vst [vmem:[%s2033_s23 + $0xc8] sm:$0xff] %v816_v38  ;;  %v947_v39 = vpop.f32.mrf.mxu3 }
 0x181   : > { %1063 = vst [vmem:[%s2033_s23 + $0xd0] sm:$0xff] %v947_v39  ;;  %v688_v40 = vpop.f32.mrf.mxu1 }
 0x182   : > { %1064 = vst [vmem:[%s2033_s23 + $0xd8] sm:$0xff] %v688_v40 }
 0x183   : > { %v485_v41 = vpop.f32.mrf.mxu0 }
 0x184   : > { %1343 = vmatmul.msk.f32.gmra.mxu1 %vm278_vm0, %v485_v41  ;;  %1381 = vmatmul.msk.f32.gmra.mxu2 %vm278_vm0, %v485_v41 }
 0x185   : > { %1419 = vmatmul.msk.f32.gmra.mxu3 %vm278_vm0, %v485_v41 }
 0x187   : > { %v819_v42 = vpop.f32.mrf.mxu2 }
 0x188   : > { %1065 = vst [vmem:[%s2033_s23 + $0xe0] sm:$0xff] %v819_v42  ;;  %v950_v43 = vpop.f32.mrf.mxu3 }
 0x189   : > { %1066 = vst [vmem:[%s2033_s23 + $0xe8] sm:$0xff] %v950_v43  ;;  %v691_v44 = vpop.f32.mrf.mxu1 }
 0x18a   : > { %1067 = vst [vmem:[%s2033_s23 + $0xf0] sm:$0xff] %v691_v44 }
 0x18b   : > { %v488_v45 = vpop.f32.mrf.mxu0 }
 0x18c   : > { %1344 = vmatmul.msk.f32.gmra.mxu1 %vm278_vm0, %v488_v45  ;;  %1382 = vmatmul.msk.f32.gmra.mxu2 %vm278_vm0, %v488_v45 }
 0x18d   : > { %1420 = vmatmul.msk.f32.gmra.mxu3 %vm278_vm0, %v488_v45 }
 0x18f   : > { %v822_v46 = vpop.f32.mrf.mxu2 }
 0x190   : > { %1068 = vst [vmem:[%s2033_s23 + $0xf8] sm:$0xff] %v822_v46  ;;  %v953_v47 = vpop.f32.mrf.mxu3 }
 0x191   : > { %1069 = vst [vmem:[%s2033_s23 + $0x100] sm:$0xff] %v953_v47  ;;  %v694_v48 = vpop.f32.mrf.mxu1 }
 0x192   : > { %1070 = vst [vmem:[%s2033_s23 + $0x108] sm:$0xff] %v694_v48 }
 0x193   : > { %v491_v49 = vpop.f32.mrf.mxu0 }
 0x194   : > { %1345 = vmatmul.msk.f32.gmra.mxu1 %vm278_vm0, %v491_v49  ;;  %1383 = vmatmul.msk.f32.gmra.mxu2 %vm278_vm0, %v491_v49 }
 0x195   : > { %1421 = vmatmul.msk.f32.gmra.mxu3 %vm278_vm0, %v491_v49 }
 0x197   : > { %v825_v50 = vpop.f32.mrf.mxu2 }
 0x198   : > { %1071 = vst [vmem:[%s2033_s23 + $0x110] sm:$0xff] %v825_v50  ;;  %v956_v51 = vpop.f32.mrf.mxu3 }
 0x199   : > { %1072 = vst [vmem:[%s2033_s23 + $0x118] sm:$0xff] %v956_v51  ;;  %v697_v52 = vpop.f32.mrf.mxu1 }
 0x19a   : > { %1073 = vst [vmem:[%s2033_s23 + $0x120] sm:$0xff] %v697_v52 }
 0x19b   : > { %v494_v53 = vpop.f32.mrf.mxu0 }
 0x19c   : > { %1346 = vmatmul.msk.f32.gmra.mxu1 %vm278_vm0, %v494_v53  ;;  %1384 = vmatmul.msk.f32.gmra.mxu2 %vm278_vm0, %v494_v53 }
 0x19d   : > { %1422 = vmatmul.msk.f32.gmra.mxu3 %vm278_vm0, %v494_v53 }
 0x19f   : > { %v828_v54 = vpop.f32.mrf.mxu2 }
 0x1a0   : > { %1074 = vst [vmem:[%s2033_s23 + $0x128] sm:$0xff] %v828_v54  ;;  %v959_v55 = vpop.f32.mrf.mxu3 }
 0x1a1   : > { %1075 = vst [vmem:[%s2033_s23 + $0x130] sm:$0xff] %v959_v55  ;;  %v700_v56 = vpop.f32.mrf.mxu1 }
 0x1a2   : > { %1076 = vst [vmem:[%s2033_s23 + $0x138] sm:$0xff] %v700_v56 }
 0x1a3   : > { %v497_v57 = vpop.f32.mrf.mxu0 }
 0x1a4   : > { %1347 = vmatmul.msk.f32.gmra.mxu1 %vm278_vm0, %v497_v57  ;;  %1385 = vmatmul.msk.f32.gmra.mxu2 %vm278_vm0, %v497_v57 }
 0x1a5   : > { %1423 = vmatmul.msk.f32.gmra.mxu3 %vm278_vm0, %v497_v57 }
 0x1a7   : > { %v831_v58 = vpop.f32.mrf.mxu2 }
 0x1a8   : > { %1077 = vst [vmem:[%s2033_s23 + $0x140] sm:$0xff] %v831_v58  ;;  %v962_v59 = vpop.f32.mrf.mxu3 }
 0x1a9   : > { %1078 = vst [vmem:[%s2033_s23 + $0x148] sm:$0xff] %v962_v59  ;;  %v703_v60 = vpop.f32.mrf.mxu1 }
 0x1aa   : > { %1079 = vst [vmem:[%s2033_s23 + $0x150] sm:$0xff] %v703_v60 }
 0x1ab   : > { %v500_v61 = vpop.f32.mrf.mxu0 }
 0x1ac   : > { %1348 = vmatmul.msk.f32.gmra.mxu1 %vm278_vm0, %v500_v61  ;;  %1386 = vmatmul.msk.f32.gmra.mxu2 %vm278_vm0, %v500_v61 }
 0x1ad   : > { %1424 = vmatmul.msk.f32.gmra.mxu3 %vm278_vm0, %v500_v61 }
 0x1af   : > { %v834_v62 = vpop.f32.mrf.mxu2 }
 0x1b0   : > { %1080 = vst [vmem:[%s2033_s23 + $0x158] sm:$0xff] %v834_v62  ;;  %v965_v63 = vpop.f32.mrf.mxu3 }
 0x1b1   : > { %1081 = vst [vmem:[%s2033_s23 + $0x160] sm:$0xff] %v965_v63  ;;  %v706_v0 = vpop.f32.mrf.mxu1 }
 0x1b2   : > { %1082 = vst [vmem:[%s2033_s23 + $0x168] sm:$0xff] %v706_v0 }
 0x1b3   : > { %v503_v1 = vpop.f32.mrf.mxu0 }
 0x1b4   : > { %1349 = vmatmul.msk.f32.gmra.mxu1 %vm278_vm0, %v503_v1  ;;  %1387 = vmatmul.msk.f32.gmra.mxu2 %vm278_vm0, %v503_v1 }
 0x1b5   : > { %1425 = vmatmul.msk.f32.gmra.mxu3 %vm278_vm0, %v503_v1 }
 0x1b7   : > { %v837_v2 = vpop.f32.mrf.mxu2 }
 0x1b8   : > { %1083 = vst [vmem:[%s2033_s23 + $0x170] sm:$0xff] %v837_v2  ;;  %v968_v3 = vpop.f32.mrf.mxu3 }
 0x1b9   : > { %1084 = vst [vmem:[%s2033_s23 + $0x178] sm:$0xff] %v968_v3  ;;  %v709_v4 = vpop.f32.mrf.mxu1 }
 0x1ba   : > { %1085 = vst [vmem:[%s2033_s23 + $0x180] sm:$0xff] %v709_v4 }
 0x1bb   : > { %v506_v5 = vpop.f32.mrf.mxu0 }
 0x1bc   : > { %1350 = vmatmul.msk.f32.gmra.mxu1 %vm278_vm0, %v506_v5  ;;  %1388 = vmatmul.msk.f32.gmra.mxu2 %vm278_vm0, %v506_v5 }
 0x1bd   : > { %1426 = vmatmul.msk.f32.gmra.mxu3 %vm278_vm0, %v506_v5 }
 0x1bf   : > { %v840_v6 = vpop.f32.mrf.mxu2 }
 0x1c0   : > { %1086 = vst [vmem:[%s2033_s23 + $0x188] sm:$0xff] %v840_v6  ;;  %v971_v7 = vpop.f32.mrf.mxu3 }
 0x1c1   : > { %1087 = vst [vmem:[%s2033_s23 + $0x190] sm:$0xff] %v971_v7  ;;  %v712_v8 = vpop.f32.mrf.mxu1 }
 0x1c2   : > { %1088 = vst [vmem:[%s2033_s23 + $0x198] sm:$0xff] %v712_v8 }
 0x1c3   : > { %v509_v9 = vpop.f32.mrf.mxu0 }
 0x1c4   : > { %1351 = vmatmul.msk.f32.gmra.mxu1 %vm278_vm0, %v509_v9  ;;  %1389 = vmatmul.msk.f32.gmra.mxu2 %vm278_vm0, %v509_v9 }
 0x1c5   : > { %1427 = vmatmul.msk.f32.gmra.mxu3 %vm278_vm0, %v509_v9 }
 0x1c7   : > { %v843_v10 = vpop.f32.mrf.mxu2 }
 0x1c8   : > { %1089 = vst [vmem:[%s2033_s23 + $0x1a0] sm:$0xff] %v843_v10  ;;  %v974_v11 = vpop.f32.mrf.mxu3 }
 0x1c9   : > { %1090 = vst [vmem:[%s2033_s23 + $0x1a8] sm:$0xff] %v974_v11  ;;  %v715_v12 = vpop.f32.mrf.mxu1 }
 0x1ca   : > { %1091 = vst [vmem:[%s2033_s23 + $0x1b0] sm:$0xff] %v715_v12 }
 0x1cb   : > { %v512_v13 = vpop.f32.mrf.mxu0 }
 0x1cc   : > { %1352 = vmatmul.msk.f32.gmra.mxu1 %vm278_vm0, %v512_v13  ;;  %1390 = vmatmul.msk.f32.gmra.mxu2 %vm278_vm0, %v512_v13 }
 0x1cd   : > { %1428 = vmatmul.msk.f32.gmra.mxu3 %vm278_vm0, %v512_v13 }
 0x1cf   : > { %v846_v14 = vpop.f32.mrf.mxu2 }
 0x1d0   : > { %1092 = vst [vmem:[%s2033_s23 + $0x1b8] sm:$0xff] %v846_v14  ;;  %v977_v15 = vpop.f32.mrf.mxu3 }
 0x1d1   : > { %1093 = vst [vmem:[%s2033_s23 + $0x1c0] sm:$0xff] %v977_v15  ;;  %v718_v16 = vpop.f32.mrf.mxu1 }
 0x1d2   : > { %1094 = vst [vmem:[%s2033_s23 + $0x1c8] sm:$0xff] %v718_v16 }
 0x1d3   : > { %v515_v17 = vpop.f32.mrf.mxu0 }
 0x1d4   : > { %1353 = vmatmul.msk.f32.gmra.mxu1 %vm278_vm0, %v515_v17  ;;  %1391 = vmatmul.msk.f32.gmra.mxu2 %vm278_vm0, %v515_v17 }
 0x1d5   : > { %1429 = vmatmul.msk.f32.gmra.mxu3 %vm278_vm0, %v515_v17 }
 0x1d7   : > { %v849_v18 = vpop.f32.mrf.mxu2 }
 0x1d8   : > { %1095 = vst [vmem:[%s2033_s23 + $0x1d0] sm:$0xff] %v849_v18  ;;  %v980_v19 = vpop.f32.mrf.mxu3 }
 0x1d9   : > { %1096 = vst [vmem:[%s2033_s23 + $0x1d8] sm:$0xff] %v980_v19  ;;  %v721_v20 = vpop.f32.mrf.mxu1 }
 0x1da   : > { %1097 = vst [vmem:[%s2033_s23 + $0x1e0] sm:$0xff] %v721_v20 }
 0x1db   : > { %v518_v21 = vpop.f32.mrf.mxu0 }
 0x1dc   : > { %1354 = vmatmul.msk.f32.gmra.mxu1 %vm278_vm0, %v518_v21  ;;  %1392 = vmatmul.msk.f32.gmra.mxu2 %vm278_vm0, %v518_v21 }
 0x1dd   : > { %1430 = vmatmul.msk.f32.gmra.mxu3 %vm278_vm0, %v518_v21 }
 0x1df   : > { %v852_v22 = vpop.f32.mrf.mxu2 }
 0x1e0   : > { %1098 = vst [vmem:[%s2033_s23 + $0x1e8] sm:$0xff] %v852_v22  ;;  %v983_v23 = vpop.f32.mrf.mxu3 }
 0x1e1   : > { %1099 = vst [vmem:[%s2033_s23 + $0x1f0] sm:$0xff] %v983_v23  ;;  %v724_v24 = vpop.f32.mrf.mxu1 }
 0x1e2   : > { %1100 = vst [vmem:[%s2033_s23 + $0x1f8] sm:$0xff] %v724_v24 }
 0x1e3   : > { %v521_v25 = vpop.f32.mrf.mxu0 }
 0x1e4   : > { %1355 = vmatmul.msk.f32.gmra.mxu1 %vm278_vm0, %v521_v25  ;;  %1393 = vmatmul.msk.f32.gmra.mxu2 %vm278_vm0, %v521_v25 }
 0x1e5   : > { %1431 = vmatmul.msk.f32.gmra.mxu3 %vm278_vm0, %v521_v25 }
 0x1e7   : > { %v855_v26 = vpop.f32.mrf.mxu2 }
 0x1e8   : > { %1101 = vst [vmem:[%s2033_s23 + $0x200] sm:$0xff] %v855_v26  ;;  %v986_v27 = vpop.f32.mrf.mxu3 }
 0x1e9   : > { %1102 = vst [vmem:[%s2033_s23 + $0x208] sm:$0xff] %v986_v27  ;;  %v727_v28 = vpop.f32.mrf.mxu1 }
 0x1ea   : > { %1103 = vst [vmem:[%s2033_s23 + $0x210] sm:$0xff] %v727_v28 }
 0x1ef   : > { %v858_v29 = vpop.f32.mrf.mxu2 }
 0x1f0   : > { %1104 = vst [vmem:[%s2033_s23 + $0x218] sm:$0xff] %v858_v29  ;;  %v989_v30 = vpop.f32.mrf.mxu3 }
 0x1f1   : > { %1105 = vst [vmem:[%s2033_s23 + $0x220] sm:$0xff] %v989_v30  ;;  %v730_v31 = vpop.f32.mrf.mxu1 }
 0x1f2   : > { %1106 = vst [vmem:[%s2033_s23 + $0x228] sm:$0xff] %v730_v31 }
 0x1f7   : > { %v861_v32 = vpop.f32.mrf.mxu2 }
 0x1f8   : > { %1107 = vst [vmem:[%s2033_s23 + $0x230] sm:$0xff] %v861_v32  ;;  %v992_v33 = vpop.f32.mrf.mxu3 }
 0x1f9   : > { %1108 = vst [vmem:[%s2033_s23 + $0x238] sm:$0xff] %v992_v33  ;;  %v733_v34 = vpop.f32.mrf.mxu1 }
 0x1fa   : > { %1109 = vst [vmem:[%s2033_s23 + $0x240] sm:$0xff] %v733_v34 }
 0x1ff   : > { %v864_v35 = vpop.f32.mrf.mxu2 }
 0x200   : > { %1110 = vst [vmem:[%s2033_s23 + $0x248] sm:$0xff] %v864_v35  ;;  %v995_v36 = vpop.f32.mrf.mxu3 }
 0x201   : > { %1111 = vst [vmem:[%s2033_s23 + $0x250] sm:$0xff] %v995_v36  ;;  %v736_v37 = vpop.f32.mrf.mxu1 }
 0x202   : > { %1112 = vst [vmem:[%s2033_s23 + $0x258] sm:$0xff] %v736_v37 }
 0x207   : > { %v867_v38 = vpop.f32.mrf.mxu2 }
 0x208   : > { %1113 = vst [vmem:[%s2033_s23 + $0x260] sm:$0xff] %v867_v38  ;;  %v998_v39 = vpop.f32.mrf.mxu3 }
 0x209   : > { %1114 = vst [vmem:[%s2033_s23 + $0x268] sm:$0xff] %v998_v39  ;;  %v739_v40 = vpop.f32.mrf.mxu1 }
 0x20a   : > { %1115 = vst [vmem:[%s2033_s23 + $0x270] sm:$0xff] %v739_v40 }
 0x20f   : > { %v870_v41 = vpop.f32.mrf.mxu2 }
 0x210   : > { %1116 = vst [vmem:[%s2033_s23 + $0x278] sm:$0xff] %v870_v41  ;;  %v1001_v42 = vpop.f32.mrf.mxu3 }
 0x211   : > { %1117 = vst [vmem:[%s2033_s23 + $0x280] sm:$0xff] %v1001_v42  ;;  %v742_v43 = vpop.f32.mrf.mxu1 }
 0x212   : > { %1118 = vst [vmem:[%s2033_s23 + $0x288] sm:$0xff] %v742_v43 }
 0x217   : > { %v873_v44 = vpop.f32.mrf.mxu2 }
 0x218   : > { %1119 = vst [vmem:[%s2033_s23 + $0x290] sm:$0xff] %v873_v44  ;;  %v1004_v45 = vpop.f32.mrf.mxu3 }
 0x219   : > { %1120 = vst [vmem:[%s2033_s23 + $0x298] sm:$0xff] %v1004_v45  ;;  %v745_v46 = vpop.f32.mrf.mxu1 }
 0x21a   : > { %1121 = vst [vmem:[%s2033_s23 + $0x2a0] sm:$0xff] %v745_v46 }
 0x21f   : > { %v876_v47 = vpop.f32.mrf.mxu2 }
 0x220   : > { %1122 = vst [vmem:[%s2033_s23 + $0x2a8] sm:$0xff] %v876_v47  ;;  %v1007_v48 = vpop.f32.mrf.mxu3 }
 0x221   : > { %1123 = vst [vmem:[%s2033_s23 + $0x2b0] sm:$0xff] %v1007_v48  ;;  %v748_v49 = vpop.f32.mrf.mxu1 }
 0x222   : > { %1124 = vst [vmem:[%s2033_s23 + $0x2b8] sm:$0xff] %v748_v49 }
 0x227   : > { %v879_v50 = vpop.f32.mrf.mxu2 }
 0x228   : > { %1125 = vst [vmem:[%s2033_s23 + $0x2c0] sm:$0xff] %v879_v50  ;;  %v1010_v51 = vpop.f32.mrf.mxu3 }
 0x229   : > { %1126 = vst [vmem:[%s2033_s23 + $0x2c8] sm:$0xff] %v1010_v51  ;;  %v751_v52 = vpop.f32.mrf.mxu1 }
 0x22a   : > { %1127 = vst [vmem:[%s2033_s23 + $0x2d0] sm:$0xff] %v751_v52 }
 0x22f   : > { %v882_v53 = vpop.f32.mrf.mxu2 }
 0x230   : > { %1128 = vst [vmem:[%s2033_s23 + $0x2d8] sm:$0xff] %v882_v53  ;;  %v1013_v54 = vpop.f32.mrf.mxu3 }
 0x231   : > { %1129 = vst [vmem:[%s2033_s23 + $0x2e0] sm:$0xff] %v1013_v54  ;;  %v754_v55 = vpop.f32.mrf.mxu1 }
 0x232   : > { %1130 = vst [vmem:[%s2033_s23 + $0x2e8] sm:$0xff] %v754_v55 }
 0x237   : > { %v885_v56 = vpop.f32.mrf.mxu2 }
 0x238   : > { %1131 = vst [vmem:[%s2033_s23 + $0x2f0] sm:$0xff] %v885_v56  ;;  %v1016_v57 = vpop.f32.mrf.mxu3 }
 0x239   : > { %1132 = vst [vmem:[%s2033_s23 + $0x2f8] sm:$0xff] %v1016_v57  ;;  %v757_v58 = vpop.f32.mrf.mxu1 }
 0x23a   : > { %1133 = vst [vmem:[%s2033_s23 + $0x300] sm:$0xff] %v757_v58 }
 0x23f   : > { %v888_v59 = vpop.f32.mrf.mxu2 }
 0x240   : > { %1134 = vst [vmem:[%s2033_s23 + $0x308] sm:$0xff] %v888_v59  ;;  %v1019_v60 = vpop.f32.mrf.mxu3 }
 0x241   : > { %1135 = vst [vmem:[%s2033_s23 + $0x310] sm:$0xff] %v1019_v60  ;;  %v760_v61 = vpop.f32.mrf.mxu1 }
 0x242   : > { %1136 = vst [vmem:[%s2033_s23 + $0x318] sm:$0xff] %v760_v61 }
 0x247   : > { %v891_v62 = vpop.f32.mrf.mxu2 }
 0x248   : > { %1137 = vst [vmem:[%s2033_s23 + $0x320] sm:$0xff] %v891_v62  ;;  %v1022_v63 = vpop.f32.mrf.mxu3 }
 0x249   : > { %1138 = vst [vmem:[%s2033_s23 + $0x328] sm:$0xff] %v1022_v63  ;;  %v763_v0 = vpop.f32.mrf.mxu1 }
 0x24a   : > { %1139 = vst [vmem:[%s2033_s23 + $0x330] sm:$0xff] %v763_v0 }
 0x24f   : > { %v894_v1 = vpop.f32.mrf.mxu2 }
 0x250   : > { %1140 = vst [vmem:[%s2033_s23 + $0x338] sm:$0xff] %v894_v1  ;;  %v1025_v2 = vpop.f32.mrf.mxu3 }
 0x251   : > { %1141 = vst [vmem:[%s2033_s23 + $0x340] sm:$0xff] %v1025_v2  ;;  %v766_v3 = vpop.f32.mrf.mxu1 }
 0x252   : > { %1142 = vst [vmem:[%s2033_s23 + $0x348] sm:$0xff] %v766_v3 }
 0x257   : > { %v897_v4 = vpop.f32.mrf.mxu2 }
 0x258   : > { %1143 = vst [vmem:[%s2033_s23 + $0x350] sm:$0xff] %v897_v4  ;;  %v1028_v5 = vpop.f32.mrf.mxu3 }
 0x259   : > { %1144 = vst [vmem:[%s2033_s23 + $0x358] sm:$0xff] %v1028_v5  ;;  %v769_v6 = vpop.f32.mrf.mxu1 }
 0x25a   : > { %1145 = vst [vmem:[%s2033_s23 + $0x360] sm:$0xff] %v769_v6 }
 0x25f   : > { %v900_v7 = vpop.f32.mrf.mxu2 }
 0x260   : > { %1146 = vst [vmem:[%s2033_s23 + $0x368] sm:$0xff] %v900_v7  ;;  %v1031_v8 = vpop.f32.mrf.mxu3 }
 0x261   : > { %1147 = vst [vmem:[%s2033_s23 + $0x370] sm:$0xff] %v1031_v8  ;;  %v772_v9 = vpop.f32.mrf.mxu1 }
 0x262   : > { %1148 = vst [vmem:[%s2033_s23 + $0x378] sm:$0xff] %v772_v9 }
 0x267   : > { %v903_v10 = vpop.f32.mrf.mxu2 }
 0x268   : > { %1149 = vst [vmem:[%s2033_s23 + $0x380] sm:$0xff] %v903_v10  ;;  %v1034_v11 = vpop.f32.mrf.mxu3 }
 0x269   : > { %1150 = vst [vmem:[%s2033_s23 + $0x388] sm:$0xff] %v1034_v11 }
 0x26a   : > { %1621 = shalt.err (!%p1618_p5)
}
 0x26b   : > { %s1703_s9 = smov 384   ;;  %s1704_s23 = smov 24  }
 0x26c   : > { %1445 = dma.vmem_to_hbm [thread:$0]  (%p1813_p3), %s1167_s4, 14592, %s1169_s5, %s1152_s10, %s1703_s9, %s1703_s9, %s1704_s23  }
 0x26d PF: > { %s2309_s24 = sld [smem:[#allocation11_spill]]  ;;  %p1462_p7 = scmp.ge.s32.totalorder %s1696_s19, 2 }
 0x26f   : > { %p1456_p9 = pnand %p1462_p7, %p1784_p6 }
 0x271   : > { %p1457_p2 = pneg %p1456_p9 }
 0x273   : > { %s1183_s25 = sand.u32 1, %s2309_s24  }
 0x274   : > { %s1184_s29 = scalar_lea.sflag [#allocation4], %s1183_s25 }
 0x275   : > { %1663 = dma.done.wait (%p1457_p2), %s1184_s29, 14592  }
 0x276   : > { %1665 = vsyncadd (%p1457_p2), %s1184_s29, 4294952704  ;;  %s20_s19 = sadd.s32 1, %s1696_s19   ;;  %s2311_s15 = sld [smem:[#allocation12_spill]] }
 0x277   : > { %p17_p8 = scmp.ge.s32.totalorder %s20_s19, 8   ;;  %s2312_s17 = sld [smem:[#allocation14_spill]] }
 0x278   : > { %s2313_s12 = smov %s1672_s13  ;;  %s2314_s13 = smov %s1676_s14 }
 0x279   : > { %s2315_s14 = smov %s1830_s6  ;;  %s2316_s16 = smov %s1692_s18 }
 0x27a   : > { %s2317_s18 = smov %s2323_s8  ;;  %19 = sbr.rel (!%p17_p8) target bundleno = 10 (0xa), region = 81 }
 0x27f   :  { %1190 = vsyncpa [#allocation3], 1 }
 0x280   :  { %1192 = vsyncpa [#allocation3 + $0x1], 1 }
 0x281   :  { %1193 = vsyncpa [#allocation6], 1 }
 0x282   :  { %1194 = vsyncpa [#allocation4], 1 }
 0x283   :  { %1196 = vsyncpa [#allocation4 + $0x1], 1 }

</bundles_post_ra>
